<compile_context>
chip_gen: v6e
topology: v6e:2x2x1
jax: 0.10.0
libtpu: 0.0.40
codegen_flags: <defaults>
</compile_context>

<pallas_src>
import functools

import jax
import jax.numpy as jnp
from jax.experimental import pallas as pl
from jax.experimental.pallas import tpu as pltpu


def _round_up(x, m):
    return (x + m - 1) // m * m


def _critic_kernel(s_ref, a_ref,
                   ws_ref, bs_ref,
                   w1h_ref, w1a_ref, b1_ref,
                   w2row_ref, b2_ref,
                   out_ref):
    # --- lin_states + ReLU (f32 accumulation, f32 elementwise) ---
    h1 = jnp.dot(s_ref[...], ws_ref[...], preferred_element_type=jnp.float32)
    h1 = jnp.maximum(h1 + bs_ref[...], 0.0)

    # --- lin1 on concat([h1, a], 1) + ReLU (concat folded into split matmuls) ---
    h1c = h1.astype(w1h_ref.dtype)   # bf16 at the matmul boundary in bf16 mode
    h2 = (jnp.dot(h1c, w1h_ref[...], preferred_element_type=jnp.float32)
          + jnp.dot(a_ref[...], w1a_ref[...], preferred_element_type=jnp.float32)
          + b1_ref[...])
    h2 = jnp.maximum(h2, 0.0)

    # --- lin2 -> scalar Q per row: VPU multiply + XLU lane reduction ---
    w2 = w2row_ref[...].astype(jnp.float32)          # (1, n_hidden), broadcasts
    q = jnp.sum(h2 * w2, axis=-1, keepdims=True)     # (TILE_B, 1)
    out_ref[...] = q + b2_ref[0, 0]                  # scalar bias from SMEM


@functools.partial(jax.jit, static_argnames=("tile_b", "compute_dtype"))
def critic_forward(s, a, params, *, tile_b=512, compute_dtype=jnp.float32):
    """Fused Critic forward. s: [B, n_states], a: [B, n_actions] -> [B, 1] f32."""
    B, n_states = s.shape
    n_actions = a.shape[1]
    ws, bs, w1h, w1a, b1, w2row, b2 = params
    n_hidden = ws.shape[1]

    # Batch tile: multiple of 8 sublanes, capped so small batches stay 1 step.
    tb = min(tile_b, _round_up(B, 8))
    b_pad = _round_up(B, tb)
    if b_pad != B:
        s = jnp.pad(s, ((0, b_pad - B), (0, 0)))
        a = jnp.pad(a, ((0, b_pad - B), (0, 0)))

    # Cast streamed activations and matmul weights (bf16 halves HBM traffic on
    # v6e/v7x); biases, w2 row and all elementwise math stay f32 (v5e-friendly).
    cd = compute_dtype
    s = s.astype(cd)
    a = a.astype(cd)
    ws_c, w1h_c, w1a_c = ws.astype(cd), w1h.astype(cd), w1a.astype(cd)

    grid = (b_pad // tb,)

    def batch_spec(feat):
        return pl.BlockSpec((tb, feat), lambda i: (i, 0))

    def resident(shape):
        return pl.BlockSpec(shape, lambda i: (0, 0))

    out = pl.pallas_call(
        _critic_kernel,
        out_shape=jax.ShapeDtypeStruct((b_pad, 1), jnp.float32),
        grid=grid,
        in_specs=[
            batch_spec(n_states),                     # s   (pipelined)
            batch_spec(n_actions),                    # a   (pipelined)
            resident((n_states, n_hidden)),           # Ws  (VMEM-resident)
            resident((1, n_hidden)),                  # bs
            resident((n_hidden, n_hidden)),           # W1_h
            resident((n_actions, n_hidden)),          # W1_a
            resident((1, n_hidden)),                  # b1
            resident((1, n_hidden)),                  # W2 as a row
            pl.BlockSpec((1, 1), lambda i: (0, 0),    # b2 scalar in SMEM
                         memory_space=pltpu.SMEM),
        ],
        out_specs=batch_spec(1),
        compiler_params=pltpu.CompilerParams(
            dimension_semantics=("parallel",),        # both TCs on v7x
        ),
    )(s, a, ws_c, bs, w1h_c, w1a_c, b1, w2row, b2)

    return out[:B]


def init_critic_params(key, n_states, n_actions, n_hidden):
    """Parameter init matching the PyTorch module's shapes.

    Weights: xavier_uniform (as in Critic.init_weights), stored as [in, out].
    Biases:  PyTorch nn.Linear default U(-1/sqrt(fan_in), 1/sqrt(fan_in)).
    lin1's weight is split along its input dim into (h1-part, a-part) so the
    concat can be folded into two exact matmuls. lin2's weight is stored as a
    (1, n_hidden) row; its bias as a (1, 1) scalar.
    """
    def xavier(key, fan_in, fan_out):
        bound = jnp.sqrt(6.0 / (fan_in + fan_out))
        return jax.random.uniform(key, (fan_in, fan_out), jnp.float32,
                                  minval=-bound, maxval=bound)

    def lin_bias(key, fan_in, fan_out):
        bound = 1.0 / jnp.sqrt(float(fan_in))
        return jax.random.uniform(key, (1, fan_out), jnp.float32,
                                  minval=-bound, maxval=bound)

    k = jax.random.split(key, 6)
    # lin_states: Linear(n_states, n_hidden)
    ws = xavier(k[0], n_states, n_hidden)
    bs = lin_bias(k[1], n_states, n_hidden)
    # lin1: Linear(n_hidden + n_actions, n_hidden), split along its input dim
    w1_full = xavier(k[2], n_hidden + n_actions, n_hidden)
    w1h, w1a = w1_full[:n_hidden, :], w1_full[n_hidden:, :]
    b1 = lin_bias(k[3], n_hidden + n_actions, n_hidden)
    # lin2: Linear(n_hidden, 1) -> stored as a row + scalar bias
    w2row = xavier(k[4], n_hidden, 1).T            # (1, n_hidden)
    b2 = lin_bias(k[5], n_hidden, 1)               # (1, 1)
    return (ws, bs, w1h, w1a, b1, w2row, b2)


def critic_ref(s, a, params, compute_dtype=jnp.float32):
    """Pure-JAX reference mirroring the kernel's mixed-precision policy."""
    ws, bs, w1h, w1a, b1, w2row, b2 = params
    cd = compute_dtype
    h1 = jax.nn.relu(
        jnp.dot(s.astype(cd), ws.astype(cd),
                preferred_element_type=jnp.float32) + bs)
    h2 = jax.nn.relu(
        jnp.dot(h1.astype(cd), w1h.astype(cd),
                preferred_element_type=jnp.float32)
        + jnp.dot(a.astype(cd), w1a.astype(cd),
                  preferred_element_type=jnp.float32)
        + b1)
    return jnp.sum(h2 * w2row, axis=-1, keepdims=True) + b2[0, 0]


if __name__ == "__main__":
    # TODO(synk): use_batch_norm=True branch (BatchNorm1d running stats) not
    # implemented; the default constructor argument (False) is reproduced here.
    B, n_states, n_actions, n_hidden = 8, 16, 4, 32

    key = jax.random.PRNGKey(0)
    k_s, k_a, k_p = jax.random.split(key, 3)
    s = jax.random.normal(k_s, (B, n_states), jnp.float32)
    a = jax.random.normal(k_a, (B, n_actions), jnp.float32)
    params = init_critic_params(k_p, n_states, n_actions, n_hidden)

    # fp32 path (exact vs reference)
    q = critic_forward(s, a, params)
    q = jax.block_until_ready(q)
    q_ref = critic_ref(s, a, params)
    assert q.shape == (B, 1), q.shape
    assert jnp.allclose(q, q_ref, atol=1e-5, rtol=1e-5), (q, q_ref)

    # bf16-streaming path (HBM-bandwidth option for v6e/v7x; f32 accumulation)
    q_bf = critic_forward(s, a, params, compute_dtype=jnp.bfloat16)
    q_bf = jax.block_until_ready(q_bf)
    q_bf_ref = critic_ref(s, a, params, compute_dtype=jnp.bfloat16)
    assert jnp.allclose(q_bf, q_bf_ref, atol=2e-3, rtol=2e-3), (q_bf, q_bf_ref)

    print("KERNEL_OK")
</pallas_src>

<mosaic_0001>
module attributes {stable_mosaic.version = 11 : i64} {
  func.func @_critic_kernel(%arg0: i32, %arg1: memref<8x16xf32, #tpu.memory_space<vmem>>, %arg2: memref<8x4xf32, #tpu.memory_space<vmem>>, %arg3: memref<16x32xf32, #tpu.memory_space<vmem>>, %arg4: memref<1x32xf32, #tpu.memory_space<vmem>>, %arg5: memref<32x32xf32, #tpu.memory_space<vmem>>, %arg6: memref<4x32xf32, #tpu.memory_space<vmem>>, %arg7: memref<1x32xf32, #tpu.memory_space<vmem>>, %arg8: memref<1x32xf32, #tpu.memory_space<vmem>>, %arg9: memref<1x1xf32, #tpu.memory_space<smem>>, %arg10: memref<8x1xf32, #tpu.memory_space<vmem>>) attributes {dimension_semantics = [#tpu.dimension_semantics<parallel>], iteration_bounds = array<i64: 1>, scalar_prefetch = 0 : i64, scratch_operands = 0 : i64, tpu.core_type = #tpu.core_type<tc>, window_params = [{transform_indices = @transform_0, window_bounds = array<i64: 8, 16>}, {transform_indices = @transform_1, window_bounds = array<i64: 8, 4>}, {pipeline_mode = #tpu.pipeline_mode<synchronous>, transform_indices = @transform_2, window_bounds = array<i64: 16, 32>}, {pipeline_mode = #tpu.pipeline_mode<synchronous>, transform_indices = @transform_3, window_bounds = array<i64: 1, 32>}, {pipeline_mode = #tpu.pipeline_mode<synchronous>, transform_indices = @transform_4, window_bounds = array<i64: 32, 32>}, {pipeline_mode = #tpu.pipeline_mode<synchronous>, transform_indices = @transform_5, window_bounds = array<i64: 4, 32>}, {pipeline_mode = #tpu.pipeline_mode<synchronous>, transform_indices = @transform_6, window_bounds = array<i64: 1, 32>}, {pipeline_mode = #tpu.pipeline_mode<synchronous>, transform_indices = @transform_7, window_bounds = array<i64: 1, 32>}, {transform_indices = @transform_8, window_bounds = array<i64: 1, 1>}, {transform_indices = @transform_9, window_bounds = array<i64: 8, 1>}]} {
    %c0 = arith.constant 0 : index
    %c0_0 = arith.constant 0 : index
    %0 = vector.load %arg1[%c0, %c0_0] : memref<8x16xf32, #tpu.memory_space<vmem>>, vector<8x16xf32>
    %c0_1 = arith.constant 0 : index
    %c0_2 = arith.constant 0 : index
    %1 = vector.load %arg3[%c0_1, %c0_2] : memref<16x32xf32, #tpu.memory_space<vmem>>, vector<16x32xf32>
    %cst = arith.constant dense<0.000000e+00> : vector<8x32xf32>
    %2 = tpu.matmul %0, %1, %cst {dimension_numbers = #tpu.dot_dimension_numbers<[1], [0], [0], [1], [0, 0, 1, 1], [], []>} : vector<8x16xf32>, vector<16x32xf32>, vector<8x32xf32> -> vector<8x32xf32>
    %c0_3 = arith.constant 0 : index
    %c0_4 = arith.constant 0 : index
    %3 = vector.load %arg4[%c0_3, %c0_4] : memref<1x32xf32, #tpu.memory_space<vmem>>, vector<1x32xf32>
    %4 = vector.broadcast %3 : vector<1x32xf32> to vector<8x32xf32>
    %5 = arith.addf %2, %4 : vector<8x32xf32>
    %cst_5 = arith.constant 0.000000e+00 : f32
    %6 = vector.broadcast %cst_5 : f32 to vector<8x32xf32>
    %7 = arith.maximumf %5, %6 : vector<8x32xf32>
    %c0_6 = arith.constant 0 : index
    %c0_7 = arith.constant 0 : index
    %8 = vector.load %arg5[%c0_6, %c0_7] : memref<32x32xf32, #tpu.memory_space<vmem>>, vector<32x32xf32>
    %cst_8 = arith.constant dense<0.000000e+00> : vector<8x32xf32>
    %9 = tpu.matmul %7, %8, %cst_8 {dimension_numbers = #tpu.dot_dimension_numbers<[1], [0], [0], [1], [0, 0, 1, 1], [], []>} : vector<8x32xf32>, vector<32x32xf32>, vector<8x32xf32> -> vector<8x32xf32>
    %c0_9 = arith.constant 0 : index
    %c0_10 = arith.constant 0 : index
    %10 = vector.load %arg2[%c0_9, %c0_10] : memref<8x4xf32, #tpu.memory_space<vmem>>, vector<8x4xf32>
    %c0_11 = arith.constant 0 : index
    %c0_12 = arith.constant 0 : index
    %11 = vector.load %arg6[%c0_11, %c0_12] : memref<4x32xf32, #tpu.memory_space<vmem>>, vector<4x32xf32>
    %cst_13 = arith.constant dense<0.000000e+00> : vector<8x32xf32>
    %12 = tpu.matmul %10, %11, %cst_13 {dimension_numbers = #tpu.dot_dimension_numbers<[1], [0], [0], [1], [0, 0, 1, 1], [], []>} : vector<8x4xf32>, vector<4x32xf32>, vector<8x32xf32> -> vector<8x32xf32>
    %13 = arith.addf %9, %12 : vector<8x32xf32>
    %c0_14 = arith.constant 0 : index
    %c0_15 = arith.constant 0 : index
    %14 = vector.load %arg7[%c0_14, %c0_15] : memref<1x32xf32, #tpu.memory_space<vmem>>, vector<1x32xf32>
    %15 = vector.broadcast %14 : vector<1x32xf32> to vector<8x32xf32>
    %16 = arith.addf %13, %15 : vector<8x32xf32>
    %cst_16 = arith.constant 0.000000e+00 : f32
    %17 = vector.broadcast %cst_16 : f32 to vector<8x32xf32>
    %18 = arith.maximumf %16, %17 : vector<8x32xf32>
    %c0_17 = arith.constant 0 : index
    %c0_18 = arith.constant 0 : index
    %19 = vector.load %arg8[%c0_17, %c0_18] : memref<1x32xf32, #tpu.memory_space<vmem>>, vector<1x32xf32>
    %20 = vector.broadcast %19 : vector<1x32xf32> to vector<8x32xf32>
    %21 = arith.mulf %18, %20 : vector<8x32xf32>
    %cst_19 = arith.constant dense<0.000000e+00> : vector<8xf32>
    %22 = vector.multi_reduction <add>, %21, %cst_19 [1] : vector<8x32xf32> to vector<8xf32>
    %23 = vector.shape_cast %22 : vector<8xf32> to vector<8x1xf32>
    %c0_20 = arith.constant 0 : index
    %c0_21 = arith.constant 0 : index
    %24 = memref.load %arg9[%c0_20, %c0_21] : memref<1x1xf32, #tpu.memory_space<smem>>
    %25 = vector.broadcast %24 : f32 to vector<8x1xf32>
    %26 = arith.addf %23, %25 : vector<8x1xf32>
    %c0_22 = arith.constant 0 : index
    %c0_23 = arith.constant 0 : index
    %27 = vector.load %arg10[%c0_22, %c0_23] : memref<8x1xf32, #tpu.memory_space<vmem>>, vector<8x1xf32>
    tpu.vector_store %arg10[%c0_22, %c0_23], %26 {strides = array<i32>} : memref<8x1xf32, #tpu.memory_space<vmem>>, vector<8x1xf32>,
    return
  }
  func.func @transform_0(%arg0: i32) -> (i32, i32) {
    %c0_i32 = arith.constant 0 : i32
    %c0_i32_0 = arith.constant 0 : i32
    return %arg0, %c0_i32 : i32, i32
  }
  func.func @transform_1(%arg0: i32) -> (i32, i32) {
    %c0_i32 = arith.constant 0 : i32
    %c0_i32_0 = arith.constant 0 : i32
    return %arg0, %c0_i32 : i32, i32
  }
  func.func @transform_2(%arg0: i32) -> (i32, i32) {
    %c0_i32 = arith.constant 0 : i32
    %c0_i32_0 = arith.constant 0 : i32
    %c0_i32_1 = arith.constant 0 : i32
    return %c0_i32, %c0_i32_0 : i32, i32
  }
  func.func @transform_3(%arg0: i32) -> (i32, i32) {
    %c0_i32 = arith.constant 0 : i32
    %c0_i32_0 = arith.constant 0 : i32
    %c0_i32_1 = arith.constant 0 : i32
    return %c0_i32, %c0_i32_0 : i32, i32
  }
  func.func @transform_4(%arg0: i32) -> (i32, i32) {
    %c0_i32 = arith.constant 0 : i32
    %c0_i32_0 = arith.constant 0 : i32
    %c0_i32_1 = arith.constant 0 : i32
    return %c0_i32, %c0_i32_0 : i32, i32
  }
  func.func @transform_5(%arg0: i32) -> (i32, i32) {
    %c0_i32 = arith.constant 0 : i32
    %c0_i32_0 = arith.constant 0 : i32
    %c0_i32_1 = arith.constant 0 : i32
    return %c0_i32, %c0_i32_0 : i32, i32
  }
  func.func @transform_6(%arg0: i32) -> (i32, i32) {
    %c0_i32 = arith.constant 0 : i32
    %c0_i32_0 = arith.constant 0 : i32
    %c0_i32_1 = arith.constant 0 : i32
    return %c0_i32, %c0_i32_0 : i32, i32
  }
  func.func @transform_7(%arg0: i32) -> (i32, i32) {
    %c0_i32 = arith.constant 0 : i32
    %c0_i32_0 = arith.constant 0 : i32
    %c0_i32_1 = arith.constant 0 : i32
    return %c0_i32, %c0_i32_0 : i32, i32
  }
  func.func @transform_8(%arg0: i32) -> (i32, i32) {
    %c0_i32 = arith.constant 0 : i32
    %c0_i32_0 = arith.constant 0 : i32
    %c0_i32_1 = arith.constant 0 : i32
    return %c0_i32, %c0_i32_0 : i32, i32
  }
  func.func @transform_9(%arg0: i32) -> (i32, i32) {
    %c0_i32 = arith.constant 0 : i32
    %c0_i32_0 = arith.constant 0 : i32
    return %arg0, %c0_i32 : i32, i32
  }
}

</mosaic_0001>

<bundles_post_ra>
// kernel: critic_forward.1
= control target key start
LH: loop header
LB: loop body
LE: loop exit
PB: predicated region body
PF: predicated region fallthrough
CT: control target
= control target key end

     0   :  { %15 = vsyncpa [#allocation4], 0  ;;  %s515_s0 = inlined_call_operand.hbm [shape: f32[8,16], index: 0, kind: input, shape index: {}]   ;;  %s516_s1 = inlined_call_operand.vmem [shape: f32[8,4], index: 1, kind: input, shape index: {}]   ;;  %s517_s2 = inlined_call_operand.vmem [shape: f32[16,32], index: 2, kind: input, shape index: {}]   ;;  %s518_s3 = inlined_call_operand.vmem [shape: f32[1,32], index: 3, kind: input, shape index: {}]   ;;  %s519_s4 = inlined_call_operand.hbm [shape: f32[32,32], index: 4, kind: input, shape index: {}]   ;;  %s520_s5 = inlined_call_operand.vmem [shape: f32[4,32], index: 5, kind: input, shape index: {}]   ;;  %s521_s6 = inlined_call_operand.vmem [shape: f32[1,32], index: 6, kind: input, shape index: {}]   ;;  %s522_s7 = inlined_call_operand.vmem [shape: f32[1,32], index: 7, kind: input, shape index: {}]   ;;  %s523_s8 = inlined_call_operand.<no memory space> [shape: f32[1,1], index: 8, kind: input, shape index: {}]   ;;  %s524_s9 = inlined_call_operand.vmem [shape: f32[8,1], index: 9, kind: output, shape index: {}]  }
   0x1   :  { %16 = vsyncpa [#allocation6], 0  ;;  %s423_s30 = smov [#allocation3]   ;;  %s424_s11 = smov [#allocation5]  }
   0x2   :  { %s23_s10 = sshll.u32 %s423_s30, 4  ;;  %s38_s12 = sshll.u32 %s424_s11, 4  ;;  %s24_s10 = int_to_ptr.vmem [resolvable:$true] %s23_s10  ;;  %s39_s12 = int_to_ptr.vmem [resolvable:$true] %s38_s12 }
   0x3   :  { %s387_s13 = scalar_lea.vmem %s24_s10, 128  ;;  %p392_p1 = scmp.lt.s32.totalorder %s24_s10, %s24_s10 }
   0x4   :  { %p388_p0 = scmp.ne.s32.totalorder %s24_s10, %s387_s13  ;;  %p393_p2 = scmp.lt.s32.totalorder %s387_s13, %s387_s13 }
   0x6   :  { %p394_p3 = por %p393_p2, %p392_p1 }
   0x8   :  { %p395_p4 = pnand %p394_p3, %p388_p0 }
   0xa   :  { %398 = shalt.err (!%p395_p4)
}
   0xb   :  { %26 = dma.hbm_to_vmem [thread:$0]  %s515_s0, 128, %s24_s10, [#allocation4]  }
   0xc   :  { %s407_s16 = scalar_lea.vmem %s39_s12, 512  ;;  %p412_p6 = scmp.lt.s32.totalorder %s39_s12, %s39_s12 }
   0xd   :  { %p408_p5 = scmp.ne.s32.totalorder %s39_s12, %s407_s16  ;;  %p413_p7 = scmp.lt.s32.totalorder %s407_s16, %s407_s16 }
   0xf   :  { %p414_p8 = por %p413_p7, %p412_p6 }
  0x11   :  { %p415_p9 = pnand %p414_p8, %p408_p5 }
  0x13   :  { %418 = shalt.err (!%p415_p9)
}
  0x14   :  { %s425_s17 = smov 128   ;;  %s426_s18 = smov 8  }
  0x15   :  { %44 = dma.hbm_to_vmem [thread:$0]  %s519_s4, 512, %s39_s12, [#allocation6], %s425_s17, %s425_s17, %s426_s18  }
  0x16   :  { %419 = dma.done.wait [#allocation4], 128  }
  0x17   :  { %420 = vsyncadd [#allocation4], 4294967168 }
  0x18   :  { %421 = dma.done.wait [#allocation6], 512  }
  0x19   :  { %422 = vsyncadd [#allocation6], 4294966784  ;;  %v427_v0 = vmov 0.0   ;;  %vm428_vm0 = vmmov 0   ;;  %v61_v1 = vld [vmem:[%s517_s2 + $0x8] sm:$0xff]  ;;  %v60_v2 = vld [vmem:[%s517_s2] sm:$0xff]  ;;  %v323_v26 = vstv %s523_s8 }
  0x1a   :  { %350 = vmatprep.subr.mxu0 %v427_v0  ;;  %354 = vmatprep.mubr.msk.f32.mxu0 %vm428_vm0, %v427_v0  ;;  %v59_v3 = vld [vmem:[#allocation3] sm:$0xff]  ;;  %vm69_vm1 = vcmask 130048   ;;  %v146_v5 = vld [vmem:[#allocation5 + $0x10] sm:$0xff]  ;;  %vm154_vm2 = vcmask 1043456   ;;  %v145_v7 = vld [vmem:[#allocation5 + $0x8] sm:$0xff]  ;;  %vm150_vm3 = vcmask 31744  }
  0x1b   :  { %362 = vmatprep.subr.mxu1 %v427_v0  ;;  %370 = vmatprep.mubr.msk.f32.mxu1 %vm428_vm0, %v427_v0  ;;  %v147_v4 = vld [vmem:[#allocation5 + $0x18] sm:$0xff]  ;;  %v144_v9 = vld [vmem:[#allocation5] sm:$0xff]  ;;  %vm228_vm4 = vcmask 261120   ;;  %vm325_vm5 = vcmask 7168  }
  0x1c   :  { %351 = vmatpush3.msra.mxu0 %v61_v1  ;;  %363 = vmatpush3.msra.mxu1 %v147_v4  ;;  %v149_v6 = vld [vmem:[%s520_s5] sm:$0xf] }
  0x1d   :  { %352 = vmatprep.subr.mxu0 %v427_v0  ;;  %364 = vmatprep.subr.mxu1 %v427_v0  ;;  %v148_v8 = vld [vmem:[%s516_s1] sm:$0xff] }
  0x1e   :  { %353 = vmatpush3.msra.mxu0 %v60_v2  ;;  %365 = vmatpush3.msra.mxu1 %v146_v5  ;;  %v333_v10 = vld [vmem:[%s518_s3] ss:$0 sm:$0xff] }
  0x1f   :  { %355 = vmatmul.mubr.msk.f32.vlgmr.msra.gmra.mxu0 %vm69_vm1, %v59_v3  ;;  %357 = vmatprep.subr.mxu0 %v427_v0  ;;  %v338_v18 = vld [vmem:[%s521_s6] ss:$0 sm:$0xff] }
  0x20   :  { %359 = vmatprep.mubr.msk.f32.mxu0 %vm428_vm0, %v427_v0  ;;  %366 = vmatprep.subr.mxu1 %v427_v0  ;;  %v339_v22 = vld [vmem:[%s522_s7] ss:$0 sm:$0xff] }
  0x21   :  { %358 = vmatpush3.msk.msra.mxu0 %vm154_vm2, %v149_v6  ;;  %367 = vmatpush3.msra.mxu1 %v145_v7 }
  0x22   :  { %368 = vmatprep.subr.mxu1 %v427_v0 }
  0x23   :  { %360 = vmatmul.mubr.msk.f32.vlgmr.msra.gmra.mxu0 %vm150_vm3, %v148_v8  ;;  %369 = vmatpush3.msra.mxu1 %v144_v9 }
  0xdf   :  { %v139_v11 = vpop.f32.mrf.mxu0 }
  0xe0   :  { %v140_v12 = vadd.f32 %v333_v10, %v139_v11 }
  0xe1   :  { %v356_v13 = vpop.f32.mrf.mxu0 }
  0xe2   :  { %v143_v14 = vmax.f32 %v140_v12, 0.0 }
  0xe3   :  { %v224_v15 = vpop.f32.mrf.mxu0 }
  0xe4   :  { %371 = vmatmul.mubr.msk.f32.vlgmr.msra.gmra.mxu1 %vm228_vm4, %v143_v14 }
  0xe5   :  { %v361_v16 = vpop.f32.mrf.mxu0 }
 0x1a4   :  { %v298_v17 = vpop.f32.mrf.mxu1 }
 0x1a5   :  { %v299_v19 = vadd.f32 %v298_v17, %v224_v15 }
 0x1a6   :  { %v372_v20 = vpop.f32.mrf.mxu1 }
 0x1a7   :  { %v309_v21 = vadd.f32 %v338_v18, %v299_v19 }
 0x1a9   :  { %v310_v23 = vmax.f32 %v309_v21, 0.0 }
 0x1ab   :  { %v318_v24 = vmul.f32 %v339_v22, %v310_v23 }
 0x1ad   :  { %v319_v25 = vsel %vm228_vm4, %v318_v24, 0.0 }
 0x1ae   :  { %320 = vadd.xlane.f32.xlu0 %v319_v25 }
 0x237   :  { %v321_v27 = vpop.xlane.xlu0 %320 }
 0x238   :  { %v324_v28 = vadd.f32 %v323_v26, %v321_v27 }
 0x23a   :  { %326 = vst.msk [vmem:[%s524_s9] sm:$0xff] %vm325_vm5, %v324_v28 }
 0x23b   :  { %331 = vsyncpa [#allocation4], 1 }
 0x23c   :  { %332 = vsyncpa [#allocation6], 1 }

</bundles_post_ra>
